<compile_context>
chip_gen: v6e
topology: v6e:2x2x1
jax: 0.10.0
libtpu: 0.0.40
codegen_flags: <defaults>
</compile_context>

<pallas_src>
import jax
import jax.numpy as jnp
from jax import lax
from jax.experimental import pallas as pl
from jax.experimental.pallas import tpu as pltpu

# Module hyper-parameters (small, but consistent with the module: the hard-coded
# attn.view(..., 8, 32) forces H=8, W=32 and n_feature = H*W = 256).
IN_CHANNELS = 128      # in_channels (512 in the default ctor; reduced to stay small)
MAX_LENGTH = 25        # max_length
N_FEATURE = 256        # n_feature == H*W
H, W = 8, 32
BATCH = 2
T_PAD = 32             # max_length padded up for tiling


def _attention_kernel(x_ref, tcomb_ref, wv_ref, we_ref, be_ref, g_ref, attn_ref):
    # Per-batch views (transposed formulation):
    #   x_ref     : (1, C, N)  bf16   enc_output as (C, H*W) == x^T
    #   tcomb_ref : (C, N)     f32    precomputed (w0 @ emb + b0)^T + wv_b
    #   wv_ref    : (C, C)     bf16   wv.weight (used untransposed: wv_w @ xT)
    #   we_ref    : (Tp, C)    bf16   we.weight, rows >= max_length zeroed
    #   be_ref    : (Tp, 1)    f32    we.bias, padded rows zero
    #   g_ref     : (1, Tp, C) f32    glimpse output (padded rows sliced outside)
    #   attn_ref  : (1, Tp, N) f32    attention, lane-dense (T, N) layout
    xT = x_ref[0]                                                        # (C, N) bf16

    # wv(enc_output) in transposed form: vT = wv_w @ xT   (MXU, bf16 in / f32 acc)
    vT = jnp.dot(wv_ref[...], xT, preferred_element_type=jnp.float32)   # (C, N) f32

    # t = tanh(t_base + wv(x) + biases); biases are folded into tcomb.
    tT = jnp.tanh(tcomb_ref[...] + vT)                                   # (C, N) f32

    # attention logits (transposed): logitsT = we_w @ tT + we_b
    logitsT = jnp.dot(we_ref[...], tT.astype(we_ref.dtype),
                      preferred_element_type=jnp.float32) + be_ref[...]  # (Tp, N)

    # softmax over N (the lane axis)
    m = jnp.max(logitsT, axis=-1, keepdims=True)                         # (Tp, 1)
    e = jnp.exp(logitsT - m)                                             # (Tp, N)
    s = jnp.sum(e, axis=-1, keepdims=True)                               # (Tp, 1)
    p = e * pl.reciprocal(s, approx=True)                                # (Tp, N)

    attn_ref[0] = p.astype(attn_ref.dtype)

    # g_output = attn @ enc_output: contract the N axis of p against the N axis
    # of xT (trans_b-style) -- MXU handles the transposed operand natively.
    g = lax.dot_general(p.astype(xT.dtype), xT,
                        dimension_numbers=(((1,), (1,)), ((), ())),
                        preferred_element_type=jnp.float32)              # (Tp, C)
    g_ref[0] = g.astype(g_ref.dtype)


def init_params(key, in_channels=IN_CHANNELS, max_length=MAX_LENGTH,
                n_feature=N_FEATURE):
    ks = jax.random.split(key, 7)
    scale = 0.05
    return {
        "emb":  scale * jax.random.normal(ks[0], (max_length, in_channels), jnp.float32),
        "w0_w": scale * jax.random.normal(ks[1], (n_feature, max_length), jnp.float32),
        "w0_b": scale * jax.random.normal(ks[2], (n_feature,), jnp.float32),
        "wv_w": scale * jax.random.normal(ks[3], (in_channels, in_channels), jnp.float32),
        "wv_b": scale * jax.random.normal(ks[4], (in_channels,), jnp.float32),
        "we_w": scale * jax.random.normal(ks[5], (max_length, in_channels), jnp.float32),
        "we_b": scale * jax.random.normal(ks[6], (max_length,), jnp.float32),
    }


def prepare_params(params):
    """One-time (outside the hot path) precompute / pad / cast of kernel inputs."""
    T, Tp, C = MAX_LENGTH, T_PAD, IN_CHANNELS
    # Batch-invariant t_base^T = (w0_w @ emb + b0)^T, with wv bias folded in.
    t_baseT = params["emb"].T @ params["w0_w"].T + params["w0_b"][None, :]   # (C, N)
    t_combT = (t_baseT + params["wv_b"][:, None]).astype(jnp.float32)        # (C, N)
    we_pad = jnp.zeros((Tp, C), jnp.bfloat16).at[:T].set(
        params["we_w"].astype(jnp.bfloat16))                                 # (Tp, C)
    be_col = jnp.zeros((Tp, 1), jnp.float32).at[:T, 0].set(params["we_b"])   # (Tp, 1)
    wv_w = params["wv_w"].astype(jnp.bfloat16)                               # (C, C)
    return {"t_combT": t_combT, "wv_w": wv_w, "we_pad": we_pad, "be_col": be_col}


@jax.jit
def attention_forward(enc_output, prep):
    B, C, Hh, Ww = enc_output.shape
    N = Hh * Ww
    T, Tp = MAX_LENGTH, T_PAD

    # NCHW is already (B, C, H*W) == x^T per batch: a free reshape, no transpose.
    xT = enc_output.reshape(B, C, N).astype(jnp.bfloat16)

    g_pad, attn_pad = pl.pallas_call(
        _attention_kernel,
        out_shape=(
            jax.ShapeDtypeStruct((B, Tp, C), jnp.float32),
            jax.ShapeDtypeStruct((B, Tp, N), jnp.float32),
        ),
        grid_spec=pltpu.PrefetchScalarGridSpec(
            num_scalar_prefetch=0,
            grid=(B,),
            in_specs=[
                pl.BlockSpec((1, C, N), lambda b: (b, 0, 0)),   # x^T
                pl.BlockSpec((C, N), lambda b: (0, 0)),         # precomputed t_comb^T
                pl.BlockSpec((C, C), lambda b: (0, 0)),         # wv weight
                pl.BlockSpec((Tp, C), lambda b: (0, 0)),        # we weight (padded)
                pl.BlockSpec((Tp, 1), lambda b: (0, 0)),        # we bias (padded)
            ],
            out_specs=[
                pl.BlockSpec((1, Tp, C), lambda b: (b, 0, 0)),  # g_output (padded T)
                pl.BlockSpec((1, Tp, N), lambda b: (b, 0, 0)),  # attn, lane-dense
            ],
        ),
        compiler_params=pltpu.CompilerParams(
            dimension_semantics=("parallel",)),
    )(xT, prep["t_combT"], prep["wv_w"], prep["we_pad"], prep["be_col"])

    # Glue: drop T padding and apply the module's hard-coded view(B, T, 8, 32).
    g_output = g_pad[:, :T, :]                  # (B, T, C)
    attn = attn_pad[:, :T, :]                   # (B, T, N) -- already in (T, N) layout
    attn_4d = attn.reshape(B, T, 8, 32)
    return g_output, attn, attn_4d


def reference_forward(enc_output, params):
    """Pure-JAX f32 replica of the PyTorch forward, for validation."""
    B, C, Hh, Ww = enc_output.shape
    N, T = Hh * Ww, MAX_LENGTH
    x = jnp.transpose(enc_output, (0, 2, 3, 1)).reshape(B, N, C)
    ro_embed = jnp.broadcast_to(params["emb"][None], (B, T, C))           # (B, T, C)
    t = jnp.einsum("bct,nt->bcn", jnp.swapaxes(ro_embed, 1, 2),
                   params["w0_w"]) + params["w0_b"]                       # (B, C, N)
    t = jnp.tanh(jnp.swapaxes(t, 1, 2)
                 + x @ params["wv_w"].T + params["wv_b"])                 # (B, N, C)
    attn_logits = t @ params["we_w"].T + params["we_b"]                   # (B, N, T)
    attn = jax.nn.softmax(jnp.swapaxes(attn_logits, 1, 2), axis=2)        # (B, T, N)
    g = jnp.einsum("btn,bnc->btc", attn, x)                               # (B, T, C)
    return g, attn


if __name__ == "__main__":
    key = jax.random.PRNGKey(0)
    pkey, xkey = jax.random.split(key)
    params = init_params(pkey)
    prep = prepare_params(params)   # padding / precompute done once, outside jit
    enc_output = jax.random.normal(
        xkey, (BATCH, IN_CHANNELS, H, W), jnp.float32)  # NCHW, like PyTorch

    g_out, attn_btn, attn_4d = attention_forward(enc_output, prep)
    jax.block_until_ready((g_out, attn_btn, attn_4d))

    g_ref, attn_ref = reference_forward(enc_output, params)
    assert g_out.shape == (BATCH, MAX_LENGTH, IN_CHANNELS)
    assert attn_btn.shape == (BATCH, MAX_LENGTH, N_FEATURE)
    assert attn_4d.shape == (BATCH, MAX_LENGTH, 8, 32)
    # bf16 MXU inputs + approx reciprocal -> looser (but still bug-catching) tolerances.
    assert jnp.allclose(g_out, g_ref, atol=5e-3, rtol=1e-2)
    assert jnp.allclose(attn_btn, attn_ref, atol=5e-4, rtol=1e-2)

    print("KERNEL_OK")
</pallas_src>

<mosaic_0001>
module attributes {stable_mosaic.version = 11 : i64} {
  func.func @_attention_kernel(%arg0: i32, %arg1: memref<1x128x256xbf16, #tpu.memory_space<vmem>>, %arg2: memref<128x256xf32, #tpu.memory_space<vmem>>, %arg3: memref<128x128xbf16, #tpu.memory_space<vmem>>, %arg4: memref<32x128xbf16, #tpu.memory_space<vmem>>, %arg5: memref<32x1xf32, #tpu.memory_space<vmem>>, %arg6: memref<1x32x128xf32, #tpu.memory_space<vmem>>, %arg7: memref<1x32x256xf32, #tpu.memory_space<vmem>>) attributes {dimension_semantics = [#tpu.dimension_semantics<parallel>], iteration_bounds = array<i64: 2>, scalar_prefetch = 0 : i64, scratch_operands = 0 : i64, tpu.core_type = #tpu.core_type<tc>, window_params = [{transform_indices = @transform_0, window_bounds = array<i64: 1, 128, 256>}, {pipeline_mode = #tpu.pipeline_mode<synchronous>, transform_indices = @transform_1, window_bounds = array<i64: 128, 256>}, {pipeline_mode = #tpu.pipeline_mode<synchronous>, transform_indices = @transform_2, window_bounds = array<i64: 128, 128>}, {pipeline_mode = #tpu.pipeline_mode<synchronous>, transform_indices = @transform_3, window_bounds = array<i64: 32, 128>}, {pipeline_mode = #tpu.pipeline_mode<synchronous>, transform_indices = @transform_4, window_bounds = array<i64: 32, 1>}, {transform_indices = @transform_5, window_bounds = array<i64: 1, 32, 128>}, {transform_indices = @transform_6, window_bounds = array<i64: 1, 32, 256>}]} {
    %c0 = arith.constant 0 : index
    %c0_0 = arith.constant 0 : index
    %c0_1 = arith.constant 0 : index
    %0 = vector.load %arg1[%c0, %c0_0, %c0_1] : memref<1x128x256xbf16, #tpu.memory_space<vmem>>, vector<1x128x256xbf16>
    %1 = vector.shape_cast %0 : vector<1x128x256xbf16> to vector<128x256xbf16>
    %c0_2 = arith.constant 0 : index
    %c0_3 = arith.constant 0 : index
    %2 = vector.load %arg3[%c0_2, %c0_3] : memref<128x128xbf16, #tpu.memory_space<vmem>>, vector<128x128xbf16>
    %cst = arith.constant dense<0.000000e+00> : vector<128x256xf32>
    %3 = tpu.matmul %2, %1, %cst {dimension_numbers = #tpu.dot_dimension_numbers<[1], [0], [0], [1], [0, 0, 1, 1], [], []>} : vector<128x128xbf16>, vector<128x256xbf16>, vector<128x256xf32> -> vector<128x256xf32>
    %c0_4 = arith.constant 0 : index
    %c0_5 = arith.constant 0 : index
    %4 = vector.load %arg2[%c0_4, %c0_5] : memref<128x256xf32, #tpu.memory_space<vmem>>, vector<128x256xf32>
    %5 = arith.addf %4, %3 : vector<128x256xf32>
    %6 = math.tanh %5 : vector<128x256xf32>
    %c0_6 = arith.constant 0 : index
    %c0_7 = arith.constant 0 : index
    %7 = vector.load %arg4[%c0_6, %c0_7] : memref<32x128xbf16, #tpu.memory_space<vmem>>, vector<32x128xbf16>
    %8 = arith.truncf %6 : vector<128x256xf32> to vector<128x256xbf16>
    %cst_8 = arith.constant dense<0.000000e+00> : vector<32x256xf32>
    %9 = tpu.matmul %7, %8, %cst_8 {dimension_numbers = #tpu.dot_dimension_numbers<[1], [0], [0], [1], [0, 0, 1, 1], [], []>} : vector<32x128xbf16>, vector<128x256xbf16>, vector<32x256xf32> -> vector<32x256xf32>
    %c0_9 = arith.constant 0 : index
    %c0_10 = arith.constant 0 : index
    %10 = vector.load %arg5[%c0_9, %c0_10] : memref<32x1xf32, #tpu.memory_space<vmem>>, vector<32x1xf32>
    %11 = vector.broadcast %10 : vector<32x1xf32> to vector<32x256xf32>
    %12 = arith.addf %9, %11 : vector<32x256xf32>
    %cst_11 = arith.constant dense<0xFF800000> : vector<32xf32>
    %13 = vector.multi_reduction <maximumf>, %12, %cst_11 [1] : vector<32x256xf32> to vector<32xf32>
    %14 = vector.shape_cast %13 : vector<32xf32> to vector<32x1xf32>
    %15 = vector.broadcast %14 : vector<32x1xf32> to vector<32x256xf32>
    %16 = arith.subf %12, %15 : vector<32x256xf32>
    %17 = math.exp %16 : vector<32x256xf32>
    %cst_12 = arith.constant dense<0.000000e+00> : vector<32xf32>
    %18 = vector.multi_reduction <add>, %17, %cst_12 [1] : vector<32x256xf32> to vector<32xf32>
    %19 = vector.shape_cast %18 : vector<32xf32> to vector<32x1xf32>
    %20 = tpu.reciprocal %19 {approx = true} : vector<32x1xf32> -> vector<32x1xf32>
    %21 = vector.broadcast %20 : vector<32x1xf32> to vector<32x256xf32>
    %22 = arith.mulf %17, %21 : vector<32x256xf32>
    %c0_13 = arith.constant 0 : index
    %c0_14 = arith.constant 0 : index
    %c0_15 = arith.constant 0 : index
    %23 = vector.load %arg7[%c0_13, %c0_14, %c0_15] : memref<1x32x256xf32, #tpu.memory_space<vmem>>, vector<1x32x256xf32>
    %24 = vector.shape_cast %23 : vector<1x32x256xf32> to vector<32x256xf32>
    %25 = vector.shape_cast %22 : vector<32x256xf32> to vector<1x32x256xf32>
    tpu.vector_store %arg7[%c0_13, %c0_14, %c0_15], %25 {strides = array<i32>} : memref<1x32x256xf32, #tpu.memory_space<vmem>>, vector<1x32x256xf32>,
    %26 = arith.truncf %22 : vector<32x256xf32> to vector<32x256xbf16>
    %cst_16 = arith.constant dense<0.000000e+00> : vector<32x128xf32>
    %27 = tpu.matmul %26, %1, %cst_16 {dimension_numbers = #tpu.dot_dimension_numbers<[1], [1], [0], [0], [0, 0, 1, 0], [], []>} : vector<32x256xbf16>, vector<128x256xbf16>, vector<32x128xf32> -> vector<32x128xf32>
    %c0_17 = arith.constant 0 : index
    %c0_18 = arith.constant 0 : index
    %c0_19 = arith.constant 0 : index
    %28 = vector.load %arg6[%c0_17, %c0_18, %c0_19] : memref<1x32x128xf32, #tpu.memory_space<vmem>>, vector<1x32x128xf32>
    %29 = vector.shape_cast %28 : vector<1x32x128xf32> to vector<32x128xf32>
    %30 = vector.shape_cast %27 : vector<32x128xf32> to vector<1x32x128xf32>
    tpu.vector_store %arg6[%c0_17, %c0_18, %c0_19], %30 {strides = array<i32>} : memref<1x32x128xf32, #tpu.memory_space<vmem>>, vector<1x32x128xf32>,
    return
  }
  func.func @transform_0(%arg0: i32) -> (i32, i32, i32) {
    %c0_i32 = arith.constant 0 : i32
    %c0_i32_0 = arith.constant 0 : i32
    %c0_i32_1 = arith.constant 0 : i32
    return %arg0, %c0_i32, %c0_i32_0 : i32, i32, i32
  }
  func.func @transform_1(%arg0: i32) -> (i32, i32) {
    %c0_i32 = arith.constant 0 : i32
    %c0_i32_0 = arith.constant 0 : i32
    %c0_i32_1 = arith.constant 0 : i32
    return %c0_i32, %c0_i32_0 : i32, i32
  }
  func.func @transform_2(%arg0: i32) -> (i32, i32) {
    %c0_i32 = arith.constant 0 : i32
    %c0_i32_0 = arith.constant 0 : i32
    %c0_i32_1 = arith.constant 0 : i32
    return %c0_i32, %c0_i32_0 : i32, i32
  }
  func.func @transform_3(%arg0: i32) -> (i32, i32) {
    %c0_i32 = arith.constant 0 : i32
    %c0_i32_0 = arith.constant 0 : i32
    %c0_i32_1 = arith.constant 0 : i32
    return %c0_i32, %c0_i32_0 : i32, i32
  }
  func.func @transform_4(%arg0: i32) -> (i32, i32) {
    %c0_i32 = arith.constant 0 : i32
    %c0_i32_0 = arith.constant 0 : i32
    %c0_i32_1 = arith.constant 0 : i32
    return %c0_i32, %c0_i32_0 : i32, i32
  }
  func.func @transform_5(%arg0: i32) -> (i32, i32, i32) {
    %c0_i32 = arith.constant 0 : i32
    %c0_i32_0 = arith.constant 0 : i32
    %c0_i32_1 = arith.constant 0 : i32
    return %arg0, %c0_i32, %c0_i32_0 : i32, i32, i32
  }
  func.func @transform_6(%arg0: i32) -> (i32, i32, i32) {
    %c0_i32 = arith.constant 0 : i32
    %c0_i32_0 = arith.constant 0 : i32
    %c0_i32_1 = arith.constant 0 : i32
    return %arg0, %c0_i32, %c0_i32_0 : i32, i32, i32
  }
}

</mosaic_0001>

<bundles_post_ra>
// kernel: attention_forward.1
= control target key start
LH: loop header
LB: loop body
LE: loop exit
PB: predicated region body
PF: predicated region fallthrough
CT: control target
= control target key end

     0   :  { %s1192_s21 = smov 0   ;;  %s1510_s0 = inlined_call_operand.vmem [shape: bf16[2,128,256], index: 0, kind: input, shape index: {}]   ;;  %s1511_s1 = inlined_call_operand.vmem [shape: f32[128,256], index: 1, kind: input, shape index: {}]   ;;  %s1512_s2 = inlined_call_operand.vmem [shape: bf16[128,128], index: 2, kind: input, shape index: {}]   ;;  %s1513_s3 = inlined_call_operand.vmem [shape: bf16[32,128], index: 3, kind: input, shape index: {}]   ;;  %s1514_s4 = inlined_call_operand.vmem [shape: f32[32,1], index: 4, kind: input, shape index: {}]   ;;  %s1515_s5 = inlined_call_operand.vmem [shape: f32[2,32,128], index: 5, kind: output, shape index: {0}]   ;;  %s1516_s6 = inlined_call_operand.vmem [shape: f32[2,32,256], index: 6, kind: output, shape index: {1}]  }
   0x1 LB: > { %s957_s22 = sadd.s32 4294967295, %s1154_s21   ;;  %p961_p0 = scmp.ge.s32.totalorder %s1154_s21, 1  ;;  %s1154_s21 = sphi %s1192_s21, %s17_s21  }
   0x2   : > { %p215_p1 = scmp.lt.s32.totalorder %s1154_s21, 3 }
   0x4   : > { %p216_p2 = pnand %p961_p0, %p215_p1 }
   0x5   : > { %p250_p3 = scmp.lt.s32.totalorder (!%p216_p2), %s957_s22, 1 }
   0x6   : > { %219 = sbr.rel (%p216_p2) target bundleno = 1078 (0x436), region = 40 }
   0xb   : > { %v1517_v0 = vmov 0   ;;  %s1521_s22 = smov (!%p250_p3, %s957_s22), 1  ;;  %v1050_v17 = vld [vmem:[%s1512_s2] sm:$0xff]   ;;  %v1051_v18 = vld [vmem:[%s1512_s2 + $0x8] sm:$0xff]   ;;  %v1052_v19 = vld [vmem:[%s1512_s2 + $0x10] sm:$0xff]  }
   0xc   : > { %458 = vmatprep.mubr.bf16.mxu0 %v1517_v0  ;;  %723 = vmatprep.mubr.bf16.mxu1 %v1517_v0  ;;  %s996_s23 = sshll.u32 %s1521_s22, 7  ;;  %v1053_v20 = vld [vmem:[%s1512_s2 + $0x18] sm:$0xff]   ;;  %v1054_v21 = vld [vmem:[%s1512_s2 + $0x20] sm:$0xff]   ;;  %v1055_v22 = vld [vmem:[%s1512_s2 + $0x28] sm:$0xff]   ;;  %s998_s7 = sshll.u32 %s1521_s22, 6 }
   0xd   : > { %1024 = vset.pattern.permute.xlu0 %v1517_v0  ;;  %1025 = vset.pattern.permute.xlu1 %v1517_v0  ;;  %s254_s26 = scalar_lea.vmem %s1510_s0, %s996_s23  ;;  %v1056_v23 = vld [vmem:[%s1512_s2 + $0x30] sm:$0xff]   ;;  %v1057_v24 = vld [vmem:[%s1512_s2 + $0x38] sm:$0xff]   ;;  %v655_v25 = vld [vmem:[%s1514_s4] sm:$0xff]  ;;  %s264_s10 = scalar_lea.vmem %s1516_s6, %s998_s7 }
   0xe   : > { %v1210_v1 = vld [vmem:[%s254_s26 + $0x74] ss:$8 sps:$4 sm:$0xff]   ;;  %v1212_v2 = vld [vmem:[%s254_s26 + $0x70] ss:$8 sps:$4 sm:$0xff]   ;;  %v1215_v3 = vld [vmem:[%s254_s26 + $0x64] ss:$8 sps:$4 sm:$0xff]   ;;  %661 = vperm.xlu0 %1024, %v655_v25  }
   0xf   : > { %426 = vmatprep.subr.bf16.mxu0 %v1210_v1  ;;  %v1218_v4 = vld [vmem:[%s254_s26 + $0x60] ss:$8 sps:$4 sm:$0xff]   ;;  %v1221_v5 = vld [vmem:[%s254_s26 + $0x54] ss:$8 sps:$4 sm:$0xff]   ;;  %v1224_v6 = vld [vmem:[%s254_s26 + $0x50] ss:$8 sps:$4 sm:$0xff]  }
  0x10   : > { %427 = vmatpush1.bf16.msra.mxu0 %v1212_v2  ;;  %v1227_v7 = vld [vmem:[%s254_s26 + $0x44] ss:$8 sps:$4 sm:$0xff]   ;;  %v1230_v8 = vld [vmem:[%s254_s26 + $0x40] ss:$8 sps:$4 sm:$0xff]   ;;  %v1233_v9 = vld [vmem:[%s254_s26 + $0x34] ss:$8 sps:$4 sm:$0xff]  }
  0x11   : > { %428 = vmatprep.subr.bf16.mxu0 %v1215_v3  ;;  %v1236_v10 = vld [vmem:[%s254_s26 + $0x30] ss:$8 sps:$4 sm:$0xff]   ;;  %v1239_v11 = vld [vmem:[%s254_s26 + $0x24] ss:$8 sps:$4 sm:$0xff]   ;;  %v1242_v12 = vld [vmem:[%s254_s26 + $0x20] ss:$8 sps:$4 sm:$0xff]  }
  0x12   : > { %v1245_v13 = vld [vmem:[%s254_s26 + $0x14] ss:$8 sps:$4 sm:$0xff]   ;;  %v1248_v14 = vld [vmem:[%s254_s26 + $0x10] ss:$8 sps:$4 sm:$0xff]   ;;  %v1251_v15 = vld [vmem:[%s254_s26 + $0x4] ss:$8 sps:$4 sm:$0xff]  }
  0x13   : > { %v1254_v16 = vld [vmem:[%s254_s26] ss:$8 sps:$4 sm:$0xff]   ;;  %v657_v26 = vld [vmem:[%s1514_s4 + $0x10] sm:$0xff]  ;;  %v658_v28 = vld [vmem:[%s1514_s4 + $0x18] sm:$0xff]  ;;  %s997_s11 = sshll.u32 %s1521_s22, 5 }
  0x14   : > { %429 = vmatpush1.bf16.msra.mxu0 %v1218_v4  ;;  %671 = vperm.xlu1 %1025, %v657_v26   ;;  %v656_v27 = vld [vmem:[%s1514_s4 + $0x8] sm:$0xff]  ;;  %v539_v29 = vld [vmem:[%s1511_s1] sm:$0xff]  ;;  %v541_v34 = vld [vmem:[%s1511_s1 + $0x10] sm:$0xff]  ;;  %s259_s14 = scalar_lea.vmem %s1515_s5, %s997_s11 }
  0x15   : > { %430 = vmatprep.subr.bf16.mxu0 %v1221_v5  ;;  %666 = vperm.xlu0 %1024, %v656_v27   ;;  %v540_v31 = vld [vmem:[%s1511_s1 + $0x8] sm:$0xff]  ;;  %v542_v37 = vld [vmem:[%s1511_s1 + $0x18] sm:$0xff]  ;;  %v543_v41 = vld [vmem:[%s1511_s1 + $0x20] sm:$0xff] }
  0x16   : > { %v544_v43 = vld [vmem:[%s1511_s1 + $0x28] sm:$0xff]  ;;  %v545_v46 = vld [vmem:[%s1511_s1 + $0x30] sm:$0xff]  ;;  %v546_v49 = vld [vmem:[%s1511_s1 + $0x38] sm:$0xff] }
  0x18   : > { %431 = vmatpush1.bf16.msra.mxu0 %v1224_v6  ;;  %676 = vperm.xlu1 %1025, %v658_v28  }
  0x19   : > { %432 = vmatprep.subr.bf16.mxu0 %v1227_v7 }
  0x1c   : > { %433 = vmatpush1.bf16.msra.mxu0 %v1230_v8 }
  0x1d   : > { %434 = vmatprep.subr.bf16.mxu0 %v1233_v9 }
  0x20   : > { %435 = vmatpush1.bf16.msra.mxu0 %v1236_v10 }
  0x21   : > { %436 = vmatprep.subr.bf16.mxu0 %v1239_v11 }
  0x24   : > { %437 = vmatpush1.bf16.msra.mxu0 %v1242_v12 }
  0x25   : > { %438 = vmatprep.subr.bf16.mxu0 %v1245_v13 }
  0x28   : > { %439 = vmatpush1.bf16.msra.mxu0 %v1248_v14 }
  0x29   : > { %440 = vmatprep.subr.bf16.mxu0 %v1251_v15 }
  0x2c   : > { %441 = vmatpush1.bf16.msra.mxu0 %v1254_v16 }
  0x2d   : > { %816 = vmatprep.subr.bf16.mxu0 %v1210_v1 }
  0x2f   : > { %459 = vmatmul.mubr.bf16.vlgmr.msra.gmra.mxu0 %v1050_v17 }
  0x30   : > { %468 = vmatprep.mubr.bf16.mxu0 %v1517_v0  ;;  %817 = vmatpush1.bf16.xpose.msra.mxu0 %v1212_v2 }
  0x31   : > { %818 = vmatprep.subr.bf16.mxu0 %v1215_v3 }
  0x37   : > { %469 = vmatmul.mubr.bf16.gmra.mxu0 %v1051_v18 }
  0x38   : > { %478 = vmatprep.mubr.bf16.mxu0 %v1517_v0  ;;  %819 = vmatpush1.bf16.xpose.msra.mxu0 %v1218_v4 }
  0x39   : > { %820 = vmatprep.subr.bf16.mxu0 %v1221_v5 }
  0x3f   : > { %479 = vmatmul.mubr.bf16.gmra.mxu0 %v1052_v19 }
  0x40   : > { %488 = vmatprep.mubr.bf16.mxu0 %v1517_v0  ;;  %821 = vmatpush1.bf16.xpose.msra.mxu0 %v1224_v6 }
  0x41   : > { %822 = vmatprep.subr.bf16.mxu0 %v1227_v7 }
  0x47   : > { %489 = vmatmul.mubr.bf16.gmra.mxu0 %v1053_v20 }
  0x48   : > { %498 = vmatprep.mubr.bf16.mxu0 %v1517_v0  ;;  %823 = vmatpush1.bf16.xpose.msra.mxu0 %v1230_v8 }
  0x49   : > { %824 = vmatprep.subr.bf16.mxu0 %v1233_v9 }
  0x4f   : > { %499 = vmatmul.mubr.bf16.gmra.mxu0 %v1054_v21 }
  0x50   : > { %508 = vmatprep.mubr.bf16.mxu0 %v1517_v0  ;;  %825 = vmatpush1.bf16.xpose.msra.mxu0 %v1236_v10 }
  0x51   : > { %826 = vmatprep.subr.bf16.mxu0 %v1239_v11 }
  0x57   : > { %509 = vmatmul.mubr.bf16.gmra.mxu0 %v1055_v22 }
  0x58   : > { %518 = vmatprep.mubr.bf16.mxu0 %v1517_v0  ;;  %827 = vmatpush1.bf16.xpose.msra.mxu0 %v1242_v12 }
  0x59   : > { %828 = vmatprep.subr.bf16.mxu0 %v1245_v13 }
  0x5f   : > { %519 = vmatmul.mubr.bf16.gmra.mxu0 %v1056_v23 }
  0x60   : > { %528 = vmatprep.mubr.bf16.mxu0 %v1517_v0  ;;  %829 = vmatpush1.bf16.xpose.msra.mxu0 %v1248_v14  ;;  %v560_v0 = vld [vmem:[%s1511_s1 + $0xa8] sm:$0xff] }
  0x61   : > { %830 = vmatprep.subr.bf16.mxu0 %v1251_v15 }
  0x67   : > { %529 = vmatmul.mubr.bf16.gmra.mxu0 %v1057_v24 }
  0x68   : > { %831 = vmatpush1.bf16.xpose.msra.mxu0 %v1254_v16 }
  0xef   : > { %v460_v30 = vpop.f32.mrf.mxu0 }
  0xf0   : > { %v571_v32 = vadd.f32 %v539_v29, %v460_v30 }
  0xf1   : > { %v462_v33 = vpop.f32.mrf.mxu0 }
  0xf2   : > { %v572_v35 = vadd.f32 %v540_v31, %v462_v33  ;;  %1060 = vtanh.f32 %v571_v32 }
  0xf3   : > { %v464_v36 = vpop.f32.mrf.mxu0 }
  0xf4   : > { %v573_v38 = vadd.f32 %v541_v34, %v464_v36 }
  0xf5   : > { %v466_v39 = vpop.f32.mrf.mxu0 }
  0xf6   : > { %1062 = vtanh.f32 %v573_v38  ;;  %v574_v40 = vadd.f32 %v542_v37, %v466_v39  ;;  %v566_v38 = vld [vmem:[%s1511_s1 + $0xd8] sm:$0xff] }
  0xf7   : > { %1064 = vtanh.f32 %v572_v35  ;;  %v470_v42 = vpop.f32.mrf.mxu0 }
  0xf8   : > { %1066 = vtanh.f32 %v574_v40  ;;  %v575_v44 = vadd.f32 %v543_v41, %v470_v42  ;;  %v568_v40 = vld [vmem:[%s1511_s1 + $0xe8] sm:$0xff] }
  0xf9   : > { %v472_v45 = vpop.f32.mrf.mxu0 }
  0xfa   : > { %v576_v47 = vadd.f32 %v544_v43, %v472_v45  ;;  %1068 = vtanh.f32 %v575_v44  ;;  %v569_v43 = vld [vmem:[%s1511_s1 + $0xf0] sm:$0xff]  ;;  %v567_v44 = vld [vmem:[%s1511_s1 + $0xe0] sm:$0xff] }
  0xfb   : > { %v474_v48 = vpop.f32.mrf.mxu0 }
  0xfc   : > { %v577_v50 = vadd.f32 %v545_v46, %v474_v48  ;;  %v564_v46 = vld [vmem:[%s1511_s1 + $0xc8] sm:$0xff]  ;;  %v570_v48 = vld [vmem:[%s1511_s1 + $0xf8] sm:$0xff] }
  0xfd   : > { %v476_v51 = vpop.f32.mrf.mxu0 }
  0xfe   : > { %1070 = vtanh.f32 %v577_v50  ;;  %v578_v52 = vadd.f32 %v546_v49, %v476_v51  ;;  %v565_v49 = vld [vmem:[%s1511_s1 + $0xd0] sm:$0xff]  ;;  %v562_v51 = vld [vmem:[%s1511_s1 + $0xb8] sm:$0xff] }
  0xff   : > { %1072 = vtanh.f32 %v576_v47  ;;  %v1341_v53 = vpop.f32.mrf.mxu0  ;;  %v1345_v55 = vpop.eup %1060 }
 0x100   : > { %1074 = vtanh.f32 %v578_v52 }
 0x101   : > { %v1343_v54 = vpop.f32.mrf.mxu0 }
 0x103   : > { %v1347_v56 = vpop.eup %1062  ;;  %v1349_v57 = vpop.f32.mrf.mxu0 }
 0x104   : > { %v1351_v58 = vpop.eup %1064 }
 0x105   : > { %v1355_v60 = vpop.eup %1066  ;;  %v1357_v61 = vpop.f32.mrf.mxu0 }
 0x106   : > { %v640_v62 = vpack.c.bf16 %v1355_v60, %v1351_v58  ;;  %v1059_v58 = vld [vmem:[%s1513_s3 + $0x8] sm:$0xff]  }
 0x107   : > { %v1361_v63 = vpop.f32.mrf.mxu0  ;;  %v1365_v18 = vpop.eup %1068 }
 0x109   : > { %v1363_v17 = vpop.f32.mrf.mxu0 }
 0x10b   : > { %v1367_v19 = vpop.eup %1070  ;;  %v1369_v20 = vpop.f32.mrf.mxu0 }
 0x10c   : > { %v1371_v21 = vpop.eup %1072  ;;  %v641_v22 = vpack.c.bf16 %v1367_v19, %v1365_v18 }
 0x10d   : > { %v1375_v23 = vpop.eup %1074  ;;  %v1377_v24 = vpop.f32.mrf.mxu0 }
 0x10e   : > { %v642_v25 = vpack.c.bf16 %v1375_v23, %v1371_v21  ;;  %v1519_v21 = vmov 0  }
 0x10f   : > { %v1381_v26 = vpop.f32.mrf.mxu0 }
 0x111   : > { %v502_v27 = vpop.f32.mrf.mxu0 }
 0x113   : > { %v504_v28 = vpop.f32.mrf.mxu0 }
 0x115   : > { %v506_v29 = vpop.f32.mrf.mxu0 }
 0x117   : > { %v510_v30 = vpop.f32.mrf.mxu0 }
 0x119   : > { %v512_v31 = vpop.f32.mrf.mxu0 }
 0x11b   : > { %v514_v32 = vpop.f32.mrf.mxu0 }
 0x11d   : > { %v516_v33 = vpop.f32.mrf.mxu0 }
 0x11f   : > { %v520_v34 = vpop.f32.mrf.mxu0 }
 0x121   : > { %v522_v35 = vpop.f32.mrf.mxu0 }
 0x123   : > { %v524_v36 = vpop.f32.mrf.mxu0 }
 0x124   : > { %v597_v59 = vadd.f32 %v565_v49, %v524_v36  ;;  %v556_v36 = vld [vmem:[%s1511_s1 + $0x88] sm:$0xff] }
 0x125   : > { %v526_v37 = vpop.f32.mrf.mxu0 }
 0x126   : > { %v598_v41 = vadd.f32 %v566_v38, %v526_v37  ;;  %v563_v38 = vld [vmem:[%s1511_s1 + $0xc0] sm:$0xff] }
 0x127   : > { %v530_v39 = vpop.f32.mrf.mxu0 }
 0x128   : > { %1076 = vtanh.f32 %v598_v41  ;;  %v599_v52 = vadd.f32 %v567_v44, %v530_v39  ;;  %v594_v41 = vadd.f32 %v562_v51, %v516_v33  ;;  %v558_v39 = vld [vmem:[%s1511_s1 + $0x98] sm:$0xff]  ;;  %v595_v44 = vadd.f32 %v563_v38, %v520_v34  ;;  %v557_v33 = vld [vmem:[%s1511_s1 + $0x90] sm:$0xff] }
 0x129   : > { %v532_v42 = vpop.f32.mrf.mxu0  ;;  %v554_v34 = vld [vmem:[%s1511_s1 + $0x78] sm:$0xff] }
 0x12a   : > { %v600_v45 = vadd.f32 %v568_v40, %v532_v42  ;;  %v596_v40 = vadd.f32 %v564_v46, %v522_v35  ;;  %v559_v35 = vld [vmem:[%s1511_s1 + $0xa0] sm:$0xff]  ;;  %v586_v49 = vadd.f32 %v554_v34, %v1377_v24  ;;  %v548_v24 = vld [vmem:[%s1511_s1 + $0x48] sm:$0xff] }
 0x12b   : > { %v534_v47 = vpop.f32.mrf.mxu0 }
 0x12c   : > { %v601_v50 = vadd.f32 %v569_v43, %v534_v47  ;;  %1078 = vtanh.f32 %v600_v45  ;;  %v561_v43 = vld [vmem:[%s1511_s1 + $0xb0] sm:$0xff]  ;;  %v592_v45 = vadd.f32 %v560_v0, %v512_v31  ;;  %v590_v47 = vadd.f32 %v558_v39, %v506_v29  ;;  %v555_v0 = vld [vmem:[%s1511_s1 + $0x80] sm:$0xff] }
 0x12d   : > { %v536_v37 = vpop.f32.mrf.mxu0  ;;  %v593_v46 = vadd.f32 %v561_v43, %v514_v32  ;;  %v588_v31 = vadd.f32 %v556_v36, %v502_v27  ;;  %v589_v32 = vadd.f32 %v557_v33, %v504_v28  ;;  %v553_v29 = vld [vmem:[%s1511_s1 + $0x70] sm:$0xff]  ;;  %v587_v27 = vadd.f32 %v555_v0, %v1381_v26  ;;  %v551_v28 = vld [vmem:[%s1511_s1 + $0x60] sm:$0xff] }
 0x12e   : > { %v602_v42 = vadd.f32 %v570_v48, %v536_v37  ;;  %1080 = vtanh.f32 %v601_v50  ;;  %v591_v48 = vadd.f32 %v559_v35, %v510_v30  ;;  %v550_v30 = vld [vmem:[%s1511_s1 + $0x58] sm:$0xff]  ;;  %v585_v37 = vadd.f32 %v553_v29, %v1369_v20  ;;  %v549_v26 = vld [vmem:[%s1511_s1 + $0x50] sm:$0xff] }
 0x12f   : > { %v580_v20 = vadd.f32 %v548_v24, %v1343_v54  ;;  %v581_v35 = vadd.f32 %v549_v26, %v1349_v57 }
 0x130   : > { %1082 = vtanh.f32 %v602_v42 }
 0x131   : > { %1084 = vtanh.f32 %v599_v52 }
 0x132   : > { %1086 = vtanh.f32 %v596_v40  ;;  %v582_v40 = vadd.f32 %v550_v30, %v1357_v61 }
 0x133   : > { %1088 = vtanh.f32 %v597_v59  ;;  %v552_v59 = vld [vmem:[%s1511_s1 + $0x68] sm:$0xff] }
 0x134   : > { %1090 = vtanh.f32 %v594_v41  ;;  %v584_v51 = vadd.f32 %v552_v59, %v1363_v17  ;;  %v583_v17 = vadd.f32 %v551_v28, %v1361_v63  ;;  %v547_v41 = vld [vmem:[%s1511_s1 + $0x40] sm:$0xff] }
 0x135   : > { %1092 = vtanh.f32 %v595_v44  ;;  %v1077_v50 = vpop.eup %1076 }
 0x136   : > { %1094 = vtanh.f32 %v592_v45 }
 0x137   : > { %1096 = vtanh.f32 %v593_v46  ;;  %v579_v46 = vadd.f32 %v547_v41, %v1341_v53 }
 0x138   : > { %1098 = vtanh.f32 %v590_v47 }
 0x139   : > { %1100 = vtanh.f32 %v591_v48  ;;  %v1079_v52 = vpop.eup %1078 }
 0x13a   : > { %1102 = vtanh.f32 %v588_v31 }
 0x13b   : > { %1104 = vtanh.f32 %v589_v32  ;;  %v1081_v38 = vpop.eup %1080 }
 0x13c   : > { %1106 = vtanh.f32 %v586_v49 }
 0x13d   : > { %v1083_v42 = vpop.eup %1082  ;;  %1108 = vtanh.f32 %v587_v27 }
 0x13e   : > { %v1085_v43 = vpop.eup %1084  ;;  %1110 = vtanh.f32 %v584_v51  ;;  %v654_v39 = vpack.c.bf16 %v1083_v42, %v1079_v52 }
 0x13f   : > { %v1087_v44 = vpop.eup %1086  ;;  %1112 = vtanh.f32 %v585_v37  ;;  %v653_v45 = vpack.c.bf16 %v1081_v38, %v1085_v43  ;;  %v1518_v43 = vpack.c.bf16 %v1347_v56, %v1345_v55 }
 0x140   : > { %v1089_v61 = vpop.eup %1088  ;;  %1114 = vtanh.f32 %v582_v40  ;;  %691 = vmatprep.subr.bf16.mxu1 %v654_v39  ;;  %v652_v36 = vpack.c.bf16 %v1077_v50, %v1087_v44 }
 0x141   : > { %v1091_v63 = vpop.eup %1090  ;;  %1116 = vtanh.f32 %v583_v17  ;;  %692 = vmatpush1.bf16.msra.mxu1 %v653_v45  ;;  %v1058_v17 = vld [vmem:[%s1513_s3] sm:$0xff]  }
 0x142   : > { %v1093_v33 = vpop.eup %1092  ;;  %1118 = vtanh.f32 %v580_v20  ;;  %693 = vmatprep.subr.bf16.mxu1 %v652_v36 }
 0x143   : > { %v1095_v54 = vpop.eup %1094  ;;  %1120 = vtanh.f32 %v581_v35  ;;  %v651_v47 = vpack.c.bf16 %v1089_v61, %v1093_v33 }
 0x144   : > { %v1097_v34 = vpop.eup %1096  ;;  %v650_v48 = vpack.c.bf16 %v1091_v63, %v1095_v54  ;;  %1122 = vtanh.f32 %v579_v46 }
 0x145   : > { %v1099_v57 = vpop.eup %1098  ;;  %694 = vmatpush1.bf16.msra.mxu1 %v651_v47 }
 0x146   : > { %v1101_v0 = vpop.eup %1100  ;;  %695 = vmatprep.subr.bf16.mxu1 %v650_v48 }
 0x147   : > { %v1103_v31 = vpop.eup %1102  ;;  %v649_v59 = vpack.c.bf16 %v1097_v34, %v1101_v0 }
 0x148   : > { %v1105_v32 = vpop.eup %1104  ;;  %v648_v29 = vpack.c.bf16 %v1099_v57, %v1103_v31 }
 0x149   : > { %v1107_v53 = vpop.eup %1106  ;;  %696 = vmatpush1.bf16.msra.mxu1 %v649_v59 }
 0x14a   : > { %v1109_v49 = vpop.eup %1108  ;;  %697 = vmatprep.subr.bf16.mxu1 %v648_v29 }
 0x14b   : > { %v1111_v30 = vpop.eup %1110  ;;  %v647_v27 = vpack.c.bf16 %v1105_v32, %v1109_v49 }
 0x14c   : > { %v1113_v50 = vpop.eup %1112  ;;  %v646_v28 = vpack.c.bf16 %v1107_v53, %v1111_v30 }
 0x14d   : > { %v1115_v51 = vpop.eup %1114  ;;  %698 = vmatpush1.bf16.msra.mxu1 %v647_v27 }
 0x14e   : > { %v1117_v52 = vpop.eup %1116  ;;  %699 = vmatprep.subr.bf16.mxu1 %v646_v28 }
 0x14f   : > { %v1119_v24 = vpop.eup %1118  ;;  %v645_v37 = vpack.c.bf16 %v1113_v50, %v1117_v52 }
 0x150   : > { %v1121_v38 = vpop.eup %1120  ;;  %v644_v26 = vpack.c.bf16 %v1115_v51, %v1119_v24 }
 0x151   : > { %700 = vmatpush1.bf16.msra.mxu1 %v645_v37  ;;  %v1123_v40 = vpop.eup %1122 }
 0x152   : > { %701 = vmatprep.subr.bf16.mxu1 %v644_v26  ;;  %v643_v42 = vpack.c.bf16 %v1121_v38, %v1123_v40 }
 0x155   : > { %702 = vmatpush1.bf16.msra.mxu1 %v643_v42 }
 0x156   : > { %703 = vmatprep.subr.bf16.mxu1 %v642_v25 }
 0x159   : > { %704 = vmatpush1.bf16.msra.mxu1 %v641_v22 }
 0x15a   : > { %705 = vmatprep.subr.bf16.mxu1 %v640_v62 }
 0x15d   : > { %706 = vmatpush1.bf16.msra.mxu1 %v1518_v43 }
 0x15e   : > { %999 = vmatprep.subr.bf16.mxu1 %v1210_v1  ;;  %v662_v1 = vpop.permute.xlu0 %661 }
 0x160   : > { %724 = vmatmul.mubr.bf16.vlgmr.msra.gmra.mxu1 %v1058_v17 }
 0x161   : > { %733 = vmatprep.mubr.bf16.mxu1 %v1519_v21  ;;  %1007 = vmatpush1.bf16.xpose.msra.mxu1 %v1212_v2 }
 0x162   : > { %1000 = vmatprep.subr.bf16.mxu1 %v1215_v3 }
 0x168   : > { %734 = vmatmul.mubr.bf16.gmra.mxu1 %v1059_v58 }
 0x169   : > { %1008 = vmatpush1.bf16.xpose.msra.mxu1 %v1218_v4 }
 0x16a   : > { %1001 = vmatprep.subr.bf16.mxu1 %v1221_v5 }
 0x171   : > { %1009 = vmatpush1.bf16.xpose.msra.mxu1 %v1224_v6  ;;  %v667_v6 = vpop.permute.xlu0 %666 }
 0x172   : > { %1002 = vmatprep.subr.bf16.mxu1 %v1227_v7 }
 0x179   : > { %1010 = vmatpush1.bf16.xpose.msra.mxu1 %v1230_v8 }
 0x17a   : > { %1003 = vmatprep.subr.bf16.mxu1 %v1233_v9 }
 0x181   : > { %1011 = vmatpush1.bf16.xpose.msra.mxu1 %v1236_v10 }
 0x182   : > { %1004 = vmatprep.subr.bf16.mxu1 %v1239_v11 }
 0x189   : > { %1012 = vmatpush1.bf16.xpose.msra.mxu1 %v1242_v12  ;;  %v672_v12 = vpop.permute.xlu1 %671 }
 0x18a   : > { %1005 = vmatprep.subr.bf16.mxu1 %v1245_v13 }
 0x18d   : > { %v677_v62 = vpop.permute.xlu1 %676 }
 0x191   : > { %1013 = vmatpush1.bf16.xpose.msra.mxu1 %v1248_v14 }
 0x192   : > { %1006 = vmatprep.subr.bf16.mxu1 %v1251_v15 }
 0x199   : > { %1014 = vmatpush1.bf16.xpose.msra.mxu1 %v1254_v16 }
 0x220   : > { %v725_v2 = vpop.f32.mrf.mxu1 }
 0x221   : > { %v726_v4 = vadd.f32 %v725_v2, %v662_v1 }
 0x222   : > { %v727_v3 = vpop.f32.mrf.mxu1 }
 0x223   : > { %v728_v5 = vadd.f32 %v727_v3, %v662_v1 }
 0x224   : > { %v729_v7 = vpop.f32.mrf.mxu1 }
 0x225   : > { %v744_v8 = vmax.f32 %v726_v4, %v728_v5  ;;  %v730_v10 = vadd.f32 %v729_v7, %v667_v6 }
 0x226   : > { %v731_v9 = vpop.f32.mrf.mxu1 }
 0x227   : > { %v732_v11 = vadd.f32 %v731_v9, %v667_v6  ;;  %745 = vmax.xlane.f32.xlu0 %v744_v8 }
 0x228   : > { %v735_v13 = vpop.f32.mrf.mxu1 }
 0x229   : > { %v747_v55 = vmax.f32 %v730_v10, %v732_v11  ;;  %v736_v56 = vadd.f32 %v735_v13, %v672_v12 }
 0x22a   : > { %v737_v14 = vpop.f32.mrf.mxu1 }
 0x22b   : > { %v738_v15 = vadd.f32 %v737_v14, %v672_v12  ;;  %748 = vmax.xlane.f32.xlu1 %v747_v55 }
 0x22c   : > { %v739_v16 = vpop.f32.mrf.mxu1 }
 0x22d   : > { %v750_v60 = vmax.f32 %v736_v56, %v738_v15  ;;  %v740_v19 = vadd.f32 %v739_v16, %v677_v62 }
 0x22e   : > { %v741_v18 = vpop.f32.mrf.mxu1 }
 0x22f   : > { %v742_v22 = vadd.f32 %v741_v18, %v677_v62  ;;  %751 = vmax.xlane.f32.xlu0 %v750_v60 }
 0x231   : > { %v753_v23 = vmax.f32 %v740_v19, %v742_v22 }
 0x233   : > { %754 = vmax.xlane.f32.xlu0 %v753_v23 }
 0x2b0   : > { %v746_v25 = vpop.xlane.xlu0 %745 }
 0x2b1   : > { %v756_v41 = vsub.f32 %v726_v4, %v746_v25  ;;  %v757_v20 = vsub.f32 %v728_v5, %v746_v25 }
 0x2b3   : > { %v764_v39 = vmul.f32 1.442695, %v756_v41  ;;  %v766_v44 = vmul.f32 1.442695, %v757_v20 }
 0x2b4   : > { %v749_v35 = vpop.xlane.xlu1 %748 }
 0x2b5   : > { %1124 = vpow2.f32 %v764_v39  ;;  %v758_v45 = vsub.f32 %v730_v10, %v749_v35  ;;  %v759_v61 = vsub.f32 %v732_v11, %v749_v35 }
 0x2b6   : > { %1126 = vpow2.f32 %v766_v44 }
 0x2b7   : > { %v768_v36 = vmul.f32 1.442695, %v758_v45  ;;  %v770_v63 = vmul.f32 1.442695, %v759_v61 }
 0x2b8   : > { %v752_v46 = vpop.xlane.xlu0 %751 }
 0x2b9   : > { %1128 = vpow2.f32 %v768_v36  ;;  %v760_v33 = vsub.f32 %v736_v56, %v752_v46  ;;  %v761_v54 = vsub.f32 %v738_v15, %v752_v46 }
 0x2ba   : > { %1130 = vpow2.f32 %v770_v63 }
 0x2bb   : > { %v772_v47 = vmul.f32 1.442695, %v760_v33  ;;  %v774_v34 = vmul.f32 1.442695, %v761_v54 }
 0x2bc   : > { %v755_v48 = vpop.xlane.xlu0 %754 }
 0x2bd   : > { %1132 = vpow2.f32 %v772_v47  ;;  %v762_v57 = vsub.f32 %v740_v19, %v755_v48  ;;  %v763_v0 = vsub.f32 %v742_v22, %v755_v48 }
 0x2be   : > { %1134 = vpow2.f32 %v774_v34 }
 0x2bf   : > { %v776_v31 = vmul.f32 1.442695, %v762_v57  ;;  %v778_v59 = vmul.f32 1.442695, %v763_v0 }
 0x2c1   : > { %1136 = vpow2.f32 %v776_v31 }
 0x2c2   : > { %v1125_v32 = vpop.eup %1124  ;;  %1138 = vpow2.f32 %v778_v59 }
 0x2c3   : > { %v1127_v29 = vpop.eup %1126 }
 0x2c4   : > { %v780_v53 = vadd.f32 %v1127_v29, %v1125_v32 }
 0x2c6   : > { %v1129_v49 = vpop.eup %1128  ;;  %781 = vadd.xlane.f32.xlu1 %v780_v53 }
 0x2c7   : > { %v1131_v30 = vpop.eup %1130 }
 0x2c8   : > { %v783_v27 = vadd.f32 %v1131_v30, %v1129_v49 }
 0x2ca   : > { %v1133_v50 = vpop.eup %1132  ;;  %784 = vadd.xlane.f32.xlu0 %v783_v27 }
 0x2cb   : > { %v1135_v28 = vpop.eup %1134 }
 0x2cc   : > { %v786_v51 = vadd.f32 %v1135_v28, %v1133_v50 }
 0x2ce   : > { %v1137_v52 = vpop.eup %1136  ;;  %787 = vadd.xlane.f32.xlu1 %v786_v51 }
 0x2cf   : > { %v1139_v24 = vpop.eup %1138 }
 0x2d0   : > { %v789_v37 = vadd.f32 %v1139_v24, %v1137_v52 }
 0x2d2   : > { %790 = vadd.xlane.f32.xlu0 %v789_v37 }
 0x34f   : > { %v782_v38 = vpop.xlane.xlu1 %781 }
 0x350   : > { %1140 = vrcp.f32 %v782_v38 }
 0x353   : > { %v785_v26 = vpop.xlane.xlu0 %784 }
 0x354   : > { %1142 = vrcp.f32 %v785_v26 }
 0x357   : > { %v788_v40 = vpop.xlane.xlu1 %787 }
 0x358   : > { %1144 = vrcp.f32 %v788_v40 }
 0x35b   : > { %v791_v42 = vpop.xlane.xlu0 %790 }
 0x35c   : > { %1146 = vrcp.f32 %v791_v42 }
 0x35d   : > { %v1141_v17 = vpop.eup %1140 }
 0x35e   : > { %v797_v43 = vmul.f32 %v1141_v17, %v1127_v29  ;;  %v796_v21 = vmul.f32 %v1141_v17, %v1125_v32 }
 0x360   : > { %805 = vst [vmem:[%s264_s10 + $0x8] sm:$0xff] %v797_v43  ;;  %804 = vst [vmem:[%s264_s10] sm:$0xff] %v796_v21 }
 0x361   : > { %v1143_v58 = vpop.eup %1142 }
 0x362   : > { %v799_v1 = vmul.f32 %v1143_v58, %v1131_v30  ;;  %v798_v2 = vmul.f32 %v1143_v58, %v1129_v49 }
 0x364   : > { %807 = vst [vmem:[%s264_s10 + $0x18] sm:$0xff] %v799_v1  ;;  %v813_v3 = vpack.c.bf16 %v799_v1, %v797_v43  ;;  %806 = vst [vmem:[%s264_s10 + $0x10] sm:$0xff] %v798_v2  ;;  %v812_v4 = vpack.c.bf16 %v798_v2, %v796_v21 }
 0x365   : > { %v1145_v5 = vpop.eup %1144 }
 0x366   : > { %v800_v6 = vmul.f32 %v1145_v5, %v1133_v50  ;;  %848 = vmatprep.mubr.bf16.mxu0 %v813_v3  ;;  %v801_v7 = vmul.f32 %v1145_v5, %v1135_v28 }
 0x367   : > { %849 = vmatmul.mubr.bf16.vlgmr.msra.gmra.mxu0 %v812_v4 }
 0x368   : > { %808 = vst [vmem:[%s264_s10 + $0x20] sm:$0xff] %v800_v6  ;;  %809 = vst [vmem:[%s264_s10 + $0x28] sm:$0xff] %v801_v7 }
 0x369   : > { %v1147_v8 = vpop.eup %1146 }
 0x36a   : > { %v802_v9 = vmul.f32 %v1147_v8, %v1137_v52  ;;  %v803_v10 = vmul.f32 %v1147_v8, %v1139_v24 }
 0x36c   : > { %810 = vst [vmem:[%s264_s10 + $0x30] sm:$0xff] %v802_v9  ;;  %811 = vst [vmem:[%s264_s10 + $0x38] sm:$0xff] %v803_v10  ;;  %v815_v11 = vpack.c.bf16 %v803_v10, %v801_v7  ;;  %v814_v12 = vpack.c.bf16 %v802_v9, %v800_v6 }
 0x36e   : > { %856 = vmatprep.mubr.bf16.mxu1 %v815_v11 }
 0x36f   : > { %857 = vmatmul.mubr.bf16.vlgmr.msra.gmra.mxu1 %v814_v12 }
 0x427   : > { %v850_v13 = vpop.f32.mrf.mxu0 }
 0x428   : > { %865 = vst [vmem:[%s259_s14] sm:$0xff] %v850_v13 }
 0x429   : > { %v852_v55 = vpop.f32.mrf.mxu0 }
 0x42b   : > { %v853_v14 = vpop.f32.mrf.mxu0 }
 0x42c   : > { %866 = vst [vmem:[%s259_s14 + $0x8] sm:$0xff] %v853_v14 }
 0x42d   : > { %v855_v56 = vpop.f32.mrf.mxu0 }
 0x42f   : > { %v858_v15 = vpop.f32.mrf.mxu1 }
 0x430   : > { %867 = vst [vmem:[%s259_s14 + $0x10] sm:$0xff] %v858_v15 }
 0x431   : > { %v860_v16 = vpop.f32.mrf.mxu1 }
 0x433   : > { %v861_v60 = vpop.f32.mrf.mxu1 }
 0x434   : > { %868 = vst [vmem:[%s259_s14 + $0x18] sm:$0xff] %v861_v60 }
 0x435   : > { %v863_v62 = vpop.f32.mrf.mxu1 }
 0x436 PF: > { %s17_s21 = sadd.s32 1, %s1154_s21  }
 0x437   : > { %p14_p4 = scmp.ge.s32.totalorder %s17_s21, 4  }
 0x439   :  { %16 = sbr.rel (!%p14_p4) target bundleno = 1 (0x1), region = 82 }

</bundles_post_ra>
